<compile_context>
chip_gen: v6e
topology: v6e:2x2x1
jax: 0.10.0
libtpu: 0.0.40
codegen_flags: <defaults>
</compile_context>

<pallas_src>
import functools

import jax
import jax.numpy as jnp
from jax.experimental import pallas as pl
from jax.experimental.pallas import tpu as pltpu

EPS = 1e-5


def _layer_norm(x, w, b):
    # One-pass mean/variance (E[x^2] - mu^2): one fewer row reduction.
    mu = jnp.mean(x, axis=-1, keepdims=True)
    var = jnp.mean(x * x, axis=-1, keepdims=True) - mu * mu
    return (x - mu) * jax.lax.rsqrt(var + EPS) * w + b


def encoder_layer_kernel(n_heads, batch_tile,
                         x_ref, wq_ref, wk_ref, wv_ref, wo_ref,
                         w1_ref, w2_ref, vec_ref, out_ref):
    N, D = x_ref.shape                 # N = batch_tile * S rows
    bt = batch_tile
    S = N // bt
    Kd = wq_ref.shape[1]
    F = w1_ref.shape[1]
    H = n_heads
    hk = Kd // H                       # per-head key dim
    hv = D // H                        # per-head value dim
    cdt = wq_ref.dtype                 # matmul operand dtype (bf16 or f32)
    use_approx = cdt != jnp.float32    # EUP reciprocal on the fast path only

    x = x_ref[...]                     # (N, D) f32 residual path
    xc = x.astype(cdt)

    # packed bias / LayerNorm vectors, zero-padded rows of width max(Kd, D, F)
    vecs = vec_ref[...]
    bq, bk = vecs[0:1, :Kd], vecs[1:2, :Kd]
    bv, bo = vecs[2:3, :D], vecs[3:4, :D]
    ln0_w, ln0_b = vecs[4:5, :D], vecs[5:6, :D]
    b1, b2 = vecs[6:7, :F], vecs[7:8, :D]
    ln1_w, ln1_b = vecs[8:9, :D], vecs[9:10, :D]

    # --- fused QKV projections: full-width MXU matmuls, f32 accumulation ----
    scale = 1.0 / float(hk) ** 0.5
    q = (jnp.dot(xc, wq_ref[...], preferred_element_type=jnp.float32) + bq) * scale
    k = jnp.dot(xc, wk_ref[...], preferred_element_type=jnp.float32) + bk
    v = jnp.dot(xc, wv_ref[...], preferred_element_type=jnp.float32) + bv
    qc, kc, vc = q.astype(cdt), k.astype(cdt), v.astype(cdt)

    # --- restack (batch, head) into a leading batch dim, once ---------------
    qh = jnp.stack([qc[b * S:(b + 1) * S, h * hk:(h + 1) * hk]
                    for b in range(bt) for h in range(H)], axis=0)  # (bt*H,S,hk)
    kh = jnp.stack([kc[b * S:(b + 1) * S, h * hk:(h + 1) * hk]
                    for b in range(bt) for h in range(H)], axis=0)
    vh = jnp.stack([vc[b * S:(b + 1) * S, h * hv:(h + 1) * hv]
                    for b in range(bt) for h in range(H)], axis=0)  # (bt*H,S,hv)

    # --- batched attention: contraction on the minor dim, no transpose ------
    s = jnp.einsum('bqd,bkd->bqk', qh, kh, preferred_element_type=jnp.float32)
    s = s - jnp.max(s, axis=-1, keepdims=True)
    p = jnp.exp(s)
    denom = jnp.sum(p, axis=-1, keepdims=True)
    if use_approx:
        p = p * pl.reciprocal(denom, approx=True)   # EUP slot, effectively free
    else:
        p = p / denom                               # exact, matches f32 reference
    o = jnp.einsum('bqk,bkd->bqd', p.astype(cdt), vh,
                   preferred_element_type=jnp.float32)              # (bt*H,S,hv)

    # --- concat heads back; single (N, D) @ (D, D) output projection --------
    o_cat = jnp.concatenate(
        [jnp.concatenate([o[b * H + h] for h in range(H)], axis=-1)  # (S, D)
         for b in range(bt)], axis=0)                                # (N, D)
    attn = jnp.dot(o_cat.astype(cdt), wo_ref[...],
                   preferred_element_type=jnp.float32) + bo
    # TODO(synk): dropout (attention / skip / FFN) is an inference-mode no-op.

    h0 = _layer_norm(attn + x, ln0_w, ln0_b)

    # --- feed-forward --------------------------------------------------------
    f = jnp.dot(h0.astype(cdt), w1_ref[...], preferred_element_type=jnp.float32) + b1
    f = jnp.maximum(f, 0.0)
    f = jnp.dot(f.astype(cdt), w2_ref[...], preferred_element_type=jnp.float32) + b2

    out_ref[...] = _layer_norm(f + h0, ln1_w, ln1_b)


def _pack_vectors(params, Kd, D, F):
    """Stack all (1, d) bias / LN vectors into one zero-padded (10, W) array."""
    W = max(Kd, D, F)
    rows = [(params["bq"], Kd), (params["bk"], Kd), (params["bv"], D),
            (params["bo"], D), (params["ln0_w"], D), (params["ln0_b"], D),
            (params["b1"], F), (params["b2"], D),
            (params["ln1_w"], D), (params["ln1_b"], D)]
    packed = jnp.zeros((len(rows), W), jnp.float32)
    for i, (vec, width) in enumerate(rows):
        packed = packed.at[i, :width].set(jnp.asarray(vec, jnp.float32).reshape(-1))
    return packed


def _pick_batch_tile(B, S, D, Kd, F, H, budget_bytes=16 * 1024 * 1024):
    """Largest batch tile whose activation working set fits the VMEM budget."""
    best = 1
    for bt in range(1, B + 1):
        if B % bt:
            continue
        if bt != B and (bt * S) % 8 != 0:   # keep row blocks sublane-aligned
            continue
        n = bt * S
        act = 4 * (6 * n * D + 3 * n * Kd + 2 * n * F) + 8 * bt * H * S * S
        if act <= budget_bytes:
            best = bt
    return best


def transformer_encoder_layer2(x, params, n_heads, *,
                               compute_dtype=jnp.bfloat16, batch_tile=None):
    B, S, D = x.shape
    Kd = params["wq"].shape[1]
    F = params["w1"].shape[1]
    if batch_tile is None:
        batch_tile = _pick_batch_tile(B, S, D, Kd, F, n_heads)
    bt = batch_tile
    assert B % bt == 0, "batch_tile must divide batch"
    N = bt * S

    # Lane-dense 2-D layout: (B*S, D) rows; wrapper reshape is free (XLA side).
    xf = jnp.asarray(x, jnp.float32).reshape(B * S, D)
    weights = [jnp.asarray(params[n], compute_dtype)
               for n in ("wq", "wk", "wv", "wo", "w1", "w2")]
    vecs = _pack_vectors(params, Kd, D, F)

    def full_spec(p):
        return pl.BlockSpec(p.shape, lambda i, _nd=p.ndim: (0,) * _nd)

    kernel = functools.partial(encoder_layer_kernel, n_heads, bt)
    out = pl.pallas_call(
        kernel,
        out_shape=jax.ShapeDtypeStruct((B * S, D), jnp.float32),
        grid=(B // bt,),
        in_specs=[pl.BlockSpec((N, D), lambda i: (i, 0))]
                + [full_spec(w) for w in weights]
                + [full_spec(vecs)],
        out_specs=pl.BlockSpec((N, D), lambda i: (i, 0)),
        compiler_params=pltpu.CompilerParams(
            dimension_semantics=("parallel",),
            vmem_limit_bytes=48 * 1024 * 1024),
    )(xf, *weights, vecs)
    return out.reshape(B, S, D)


def reference(x, params, n_heads):
    """Pure-JAX f32 reference of the same forward pass."""
    B, S, D = x.shape
    Kd = params["wq"].shape[1]
    hk, hv = Kd // n_heads, D // n_heads

    q = x @ params["wq"] + params["bq"]
    k = x @ params["wk"] + params["bk"]
    v = x @ params["wv"] + params["bv"]
    q = q.reshape(B, S, n_heads, hk).transpose(0, 2, 1, 3)
    k = k.reshape(B, S, n_heads, hk).transpose(0, 2, 1, 3)
    v = v.reshape(B, S, n_heads, hv).transpose(0, 2, 1, 3)
    s = jnp.einsum("bhqd,bhkd->bhqk", q, k) / jnp.sqrt(float(hk))
    p = jax.nn.softmax(s, axis=-1)
    o = jnp.einsum("bhqk,bhkd->bhqd", p, v)
    o = o.transpose(0, 2, 1, 3).reshape(B, S, D)
    attn = o @ params["wo"] + params["bo"]

    def ln(y, w, b):
        mu = jnp.mean(y, axis=-1, keepdims=True)
        var = jnp.mean((y - mu) ** 2, axis=-1, keepdims=True)
        return (y - mu) / jnp.sqrt(var + EPS) * w + b

    h0 = ln(attn + x, params["ln0_w"], params["ln0_b"])
    f = jnp.maximum(h0 @ params["w1"] + params["b1"], 0.0)
    f = f @ params["w2"] + params["b2"]
    return ln(f + h0, params["ln1_w"], params["ln1_b"])


def init_params(key, kdim, vdim, forward_expansion):
    fdim = vdim * forward_expansion
    keys = jax.random.split(key, 8)

    def lin(k, din, dout):
        w = jax.random.normal(k, (din, dout), jnp.float32) * (1.0 / jnp.sqrt(din))
        b = jnp.zeros((1, dout), jnp.float32)
        return w, b

    wq, bq = lin(keys[0], vdim, kdim)
    wk, bk = lin(keys[1], vdim, kdim)
    wv, bv = lin(keys[2], vdim, vdim)
    wo, bo = lin(keys[3], vdim, vdim)
    w1, b1 = lin(keys[4], vdim, fdim)
    w2, b2 = lin(keys[5], fdim, vdim)
    return {
        "wq": wq, "bq": bq, "wk": wk, "bk": bk, "wv": wv, "bv": bv,
        "wo": wo, "bo": bo,
        "ln0_w": jnp.ones((1, vdim), jnp.float32),
        "ln0_b": jnp.zeros((1, vdim), jnp.float32),
        "w1": w1, "b1": b1, "w2": w2, "b2": b2,
        "ln1_w": jnp.ones((1, vdim), jnp.float32),
        "ln1_b": jnp.zeros((1, vdim), jnp.float32),
    }


if __name__ == "__main__":
    B, S = 2, 8
    kdim, vdim, n_heads, forward_expansion = 32, 32, 4, 2

    key = jax.random.PRNGKey(0)
    kx, kp = jax.random.split(key)
    x = jax.random.normal(kx, (B, S, vdim), jnp.float32)
    params = init_params(kp, kdim, vdim, forward_expansion)

    ref = reference(x, params, n_heads)

    # Exact-precision path: all matmuls in f32 -> tight tolerance.
    out_f32 = jax.block_until_ready(
        transformer_encoder_layer2(x, params, n_heads, compute_dtype=jnp.float32))
    assert out_f32.shape == (B, S, vdim)
    assert jnp.allclose(out_f32, ref, atol=1e-4, rtol=1e-4), "f32 mismatch vs reference"

    # bf16 MXU fast path (f32 accumulation); tolerance loosened for bf16
    # operand rounding as anticipated in the perf review.
    out_bf16 = jax.block_until_ready(
        transformer_encoder_layer2(x, params, n_heads, compute_dtype=jnp.bfloat16))
    assert out_bf16.shape == (B, S, vdim)
    assert jnp.allclose(out_bf16, ref, atol=1e-1, rtol=1e-1), "bf16 mismatch vs reference"

    print("KERNEL_OK")
</pallas_src>

<mosaic_0001>
module attributes {stable_mosaic.version = 11 : i64} {
  func.func @encoder_layer_kernel(%arg0: i32, %arg1: memref<16x32xf32, #tpu.memory_space<vmem>>, %arg2: memref<32x32xf32, #tpu.memory_space<vmem>>, %arg3: memref<32x32xf32, #tpu.memory_space<vmem>>, %arg4: memref<32x32xf32, #tpu.memory_space<vmem>>, %arg5: memref<32x32xf32, #tpu.memory_space<vmem>>, %arg6: memref<32x64xf32, #tpu.memory_space<vmem>>, %arg7: memref<64x32xf32, #tpu.memory_space<vmem>>, %arg8: memref<10x64xf32, #tpu.memory_space<vmem>>, %arg9: memref<16x32xf32, #tpu.memory_space<vmem>>) attributes {dimension_semantics = [#tpu.dimension_semantics<parallel>], iteration_bounds = array<i64: 1>, scalar_prefetch = 0 : i64, scratch_operands = 0 : i64, tpu.core_type = #tpu.core_type<tc>, window_params = [{transform_indices = @transform_0, window_bounds = array<i64: 16, 32>}, {pipeline_mode = #tpu.pipeline_mode<synchronous>, transform_indices = @transform_1, window_bounds = array<i64: 32, 32>}, {pipeline_mode = #tpu.pipeline_mode<synchronous>, transform_indices = @transform_2, window_bounds = array<i64: 32, 32>}, {pipeline_mode = #tpu.pipeline_mode<synchronous>, transform_indices = @transform_3, window_bounds = array<i64: 32, 32>}, {pipeline_mode = #tpu.pipeline_mode<synchronous>, transform_indices = @transform_4, window_bounds = array<i64: 32, 32>}, {pipeline_mode = #tpu.pipeline_mode<synchronous>, transform_indices = @transform_5, window_bounds = array<i64: 32, 64>}, {pipeline_mode = #tpu.pipeline_mode<synchronous>, transform_indices = @transform_6, window_bounds = array<i64: 64, 32>}, {pipeline_mode = #tpu.pipeline_mode<synchronous>, transform_indices = @transform_7, window_bounds = array<i64: 10, 64>}, {transform_indices = @transform_8, window_bounds = array<i64: 16, 32>}]} {
    %c0 = arith.constant 0 : index
    %c0_0 = arith.constant 0 : index
    %0 = vector.load %arg1[%c0, %c0_0] : memref<16x32xf32, #tpu.memory_space<vmem>>, vector<16x32xf32>
    %c0_1 = arith.constant 0 : index
    %c0_2 = arith.constant 0 : index
    %1 = vector.load %arg8[%c0_1, %c0_2] : memref<10x64xf32, #tpu.memory_space<vmem>>, vector<10x64xf32>
    %2 = vector.extract_strided_slice %1 {offsets = [0, 0], sizes = [1, 32], strides = [1, 1]} : vector<10x64xf32> to vector<1x32xf32>
    %3 = vector.extract_strided_slice %1 {offsets = [1, 0], sizes = [1, 32], strides = [1, 1]} : vector<10x64xf32> to vector<1x32xf32>
    %4 = vector.extract_strided_slice %1 {offsets = [2, 0], sizes = [1, 32], strides = [1, 1]} : vector<10x64xf32> to vector<1x32xf32>
    %5 = vector.extract_strided_slice %1 {offsets = [3, 0], sizes = [1, 32], strides = [1, 1]} : vector<10x64xf32> to vector<1x32xf32>
    %6 = vector.extract_strided_slice %1 {offsets = [4, 0], sizes = [1, 32], strides = [1, 1]} : vector<10x64xf32> to vector<1x32xf32>
    %7 = vector.extract_strided_slice %1 {offsets = [5, 0], sizes = [1, 32], strides = [1, 1]} : vector<10x64xf32> to vector<1x32xf32>
    %8 = vector.extract_strided_slice %1 {offsets = [6, 0], sizes = [1, 64], strides = [1, 1]} : vector<10x64xf32> to vector<1x64xf32>
    %9 = vector.extract_strided_slice %1 {offsets = [7, 0], sizes = [1, 32], strides = [1, 1]} : vector<10x64xf32> to vector<1x32xf32>
    %10 = vector.extract_strided_slice %1 {offsets = [8, 0], sizes = [1, 32], strides = [1, 1]} : vector<10x64xf32> to vector<1x32xf32>
    %11 = vector.extract_strided_slice %1 {offsets = [9, 0], sizes = [1, 32], strides = [1, 1]} : vector<10x64xf32> to vector<1x32xf32>
    %c0_3 = arith.constant 0 : index
    %c0_4 = arith.constant 0 : index
    %12 = vector.load %arg2[%c0_3, %c0_4] : memref<32x32xf32, #tpu.memory_space<vmem>>, vector<32x32xf32>
    %cst = arith.constant dense<0.000000e+00> : vector<16x32xf32>
    %13 = tpu.matmul %0, %12, %cst {dimension_numbers = #tpu.dot_dimension_numbers<[1], [0], [0], [1], [0, 0, 1, 1], [], []>} : vector<16x32xf32>, vector<32x32xf32>, vector<16x32xf32> -> vector<16x32xf32>
    %14 = vector.broadcast %2 : vector<1x32xf32> to vector<16x32xf32>
    %15 = arith.addf %13, %14 : vector<16x32xf32>
    %cst_5 = arith.constant 0.353553385 : f32
    %16 = vector.broadcast %cst_5 : f32 to vector<16x32xf32>
    %17 = arith.mulf %15, %16 : vector<16x32xf32>
    %c0_6 = arith.constant 0 : index
    %c0_7 = arith.constant 0 : index
    %18 = vector.load %arg3[%c0_6, %c0_7] : memref<32x32xf32, #tpu.memory_space<vmem>>, vector<32x32xf32>
    %cst_8 = arith.constant dense<0.000000e+00> : vector<16x32xf32>
    %19 = tpu.matmul %0, %18, %cst_8 {dimension_numbers = #tpu.dot_dimension_numbers<[1], [0], [0], [1], [0, 0, 1, 1], [], []>} : vector<16x32xf32>, vector<32x32xf32>, vector<16x32xf32> -> vector<16x32xf32>
    %20 = vector.broadcast %3 : vector<1x32xf32> to vector<16x32xf32>
    %21 = arith.addf %19, %20 : vector<16x32xf32>
    %c0_9 = arith.constant 0 : index
    %c0_10 = arith.constant 0 : index
    %22 = vector.load %arg4[%c0_9, %c0_10] : memref<32x32xf32, #tpu.memory_space<vmem>>, vector<32x32xf32>
    %cst_11 = arith.constant dense<0.000000e+00> : vector<16x32xf32>
    %23 = tpu.matmul %0, %22, %cst_11 {dimension_numbers = #tpu.dot_dimension_numbers<[1], [0], [0], [1], [0, 0, 1, 1], [], []>} : vector<16x32xf32>, vector<32x32xf32>, vector<16x32xf32> -> vector<16x32xf32>
    %24 = vector.broadcast %4 : vector<1x32xf32> to vector<16x32xf32>
    %25 = arith.addf %23, %24 : vector<16x32xf32>
    %26 = vector.extract_strided_slice %17 {offsets = [0, 0], sizes = [8, 8], strides = [1, 1]} : vector<16x32xf32> to vector<8x8xf32>
    %27 = vector.extract_strided_slice %17 {offsets = [0, 8], sizes = [8, 8], strides = [1, 1]} : vector<16x32xf32> to vector<8x8xf32>
    %28 = vector.extract_strided_slice %17 {offsets = [0, 16], sizes = [8, 8], strides = [1, 1]} : vector<16x32xf32> to vector<8x8xf32>
    %29 = vector.extract_strided_slice %17 {offsets = [0, 24], sizes = [8, 8], strides = [1, 1]} : vector<16x32xf32> to vector<8x8xf32>
    %30 = vector.extract_strided_slice %17 {offsets = [8, 0], sizes = [8, 8], strides = [1, 1]} : vector<16x32xf32> to vector<8x8xf32>
    %31 = vector.extract_strided_slice %17 {offsets = [8, 8], sizes = [8, 8], strides = [1, 1]} : vector<16x32xf32> to vector<8x8xf32>
    %32 = vector.extract_strided_slice %17 {offsets = [8, 16], sizes = [8, 8], strides = [1, 1]} : vector<16x32xf32> to vector<8x8xf32>
    %33 = vector.extract_strided_slice %17 {offsets = [8, 24], sizes = [8, 8], strides = [1, 1]} : vector<16x32xf32> to vector<8x8xf32>
    %34 = vector.shape_cast %26 : vector<8x8xf32> to vector<1x8x8xf32>
    %35 = vector.shape_cast %27 : vector<8x8xf32> to vector<1x8x8xf32>
    %36 = vector.shape_cast %28 : vector<8x8xf32> to vector<1x8x8xf32>
    %37 = vector.shape_cast %29 : vector<8x8xf32> to vector<1x8x8xf32>
    %38 = vector.shape_cast %30 : vector<8x8xf32> to vector<1x8x8xf32>
    %39 = vector.shape_cast %31 : vector<8x8xf32> to vector<1x8x8xf32>
    %40 = vector.shape_cast %32 : vector<8x8xf32> to vector<1x8x8xf32>
    %41 = vector.shape_cast %33 : vector<8x8xf32> to vector<1x8x8xf32>
    %42 = tpu.concatenate %34, %35, %36, %37, %38, %39, %40, %41 in 0 : vector<1x8x8xf32>, vector<1x8x8xf32>, vector<1x8x8xf32>, vector<1x8x8xf32>, vector<1x8x8xf32>, vector<1x8x8xf32>, vector<1x8x8xf32>, vector<1x8x8xf32> -> vector<8x8x8xf32>
    %43 = vector.extract_strided_slice %21 {offsets = [0, 0], sizes = [8, 8], strides = [1, 1]} : vector<16x32xf32> to vector<8x8xf32>
    %44 = vector.extract_strided_slice %21 {offsets = [0, 8], sizes = [8, 8], strides = [1, 1]} : vector<16x32xf32> to vector<8x8xf32>
    %45 = vector.extract_strided_slice %21 {offsets = [0, 16], sizes = [8, 8], strides = [1, 1]} : vector<16x32xf32> to vector<8x8xf32>
    %46 = vector.extract_strided_slice %21 {offsets = [0, 24], sizes = [8, 8], strides = [1, 1]} : vector<16x32xf32> to vector<8x8xf32>
    %47 = vector.extract_strided_slice %21 {offsets = [8, 0], sizes = [8, 8], strides = [1, 1]} : vector<16x32xf32> to vector<8x8xf32>
    %48 = vector.extract_strided_slice %21 {offsets = [8, 8], sizes = [8, 8], strides = [1, 1]} : vector<16x32xf32> to vector<8x8xf32>
    %49 = vector.extract_strided_slice %21 {offsets = [8, 16], sizes = [8, 8], strides = [1, 1]} : vector<16x32xf32> to vector<8x8xf32>
    %50 = vector.extract_strided_slice %21 {offsets = [8, 24], sizes = [8, 8], strides = [1, 1]} : vector<16x32xf32> to vector<8x8xf32>
    %51 = vector.shape_cast %43 : vector<8x8xf32> to vector<1x8x8xf32>
    %52 = vector.shape_cast %44 : vector<8x8xf32> to vector<1x8x8xf32>
    %53 = vector.shape_cast %45 : vector<8x8xf32> to vector<1x8x8xf32>
    %54 = vector.shape_cast %46 : vector<8x8xf32> to vector<1x8x8xf32>
    %55 = vector.shape_cast %47 : vector<8x8xf32> to vector<1x8x8xf32>
    %56 = vector.shape_cast %48 : vector<8x8xf32> to vector<1x8x8xf32>
    %57 = vector.shape_cast %49 : vector<8x8xf32> to vector<1x8x8xf32>
    %58 = vector.shape_cast %50 : vector<8x8xf32> to vector<1x8x8xf32>
    %59 = tpu.concatenate %51, %52, %53, %54, %55, %56, %57, %58 in 0 : vector<1x8x8xf32>, vector<1x8x8xf32>, vector<1x8x8xf32>, vector<1x8x8xf32>, vector<1x8x8xf32>, vector<1x8x8xf32>, vector<1x8x8xf32>, vector<1x8x8xf32> -> vector<8x8x8xf32>
    %60 = vector.extract_strided_slice %25 {offsets = [0, 0], sizes = [8, 8], strides = [1, 1]} : vector<16x32xf32> to vector<8x8xf32>
    %61 = vector.extract_strided_slice %25 {offsets = [0, 8], sizes = [8, 8], strides = [1, 1]} : vector<16x32xf32> to vector<8x8xf32>
    %62 = vector.extract_strided_slice %25 {offsets = [0, 16], sizes = [8, 8], strides = [1, 1]} : vector<16x32xf32> to vector<8x8xf32>
    %63 = vector.extract_strided_slice %25 {offsets = [0, 24], sizes = [8, 8], strides = [1, 1]} : vector<16x32xf32> to vector<8x8xf32>
    %64 = vector.extract_strided_slice %25 {offsets = [8, 0], sizes = [8, 8], strides = [1, 1]} : vector<16x32xf32> to vector<8x8xf32>
    %65 = vector.extract_strided_slice %25 {offsets = [8, 8], sizes = [8, 8], strides = [1, 1]} : vector<16x32xf32> to vector<8x8xf32>
    %66 = vector.extract_strided_slice %25 {offsets = [8, 16], sizes = [8, 8], strides = [1, 1]} : vector<16x32xf32> to vector<8x8xf32>
    %67 = vector.extract_strided_slice %25 {offsets = [8, 24], sizes = [8, 8], strides = [1, 1]} : vector<16x32xf32> to vector<8x8xf32>
    %68 = vector.shape_cast %60 : vector<8x8xf32> to vector<1x8x8xf32>
    %69 = vector.shape_cast %61 : vector<8x8xf32> to vector<1x8x8xf32>
    %70 = vector.shape_cast %62 : vector<8x8xf32> to vector<1x8x8xf32>
    %71 = vector.shape_cast %63 : vector<8x8xf32> to vector<1x8x8xf32>
    %72 = vector.shape_cast %64 : vector<8x8xf32> to vector<1x8x8xf32>
    %73 = vector.shape_cast %65 : vector<8x8xf32> to vector<1x8x8xf32>
    %74 = vector.shape_cast %66 : vector<8x8xf32> to vector<1x8x8xf32>
    %75 = vector.shape_cast %67 : vector<8x8xf32> to vector<1x8x8xf32>
    %76 = tpu.concatenate %68, %69, %70, %71, %72, %73, %74, %75 in 0 : vector<1x8x8xf32>, vector<1x8x8xf32>, vector<1x8x8xf32>, vector<1x8x8xf32>, vector<1x8x8xf32>, vector<1x8x8xf32>, vector<1x8x8xf32>, vector<1x8x8xf32> -> vector<8x8x8xf32>
    "tpu.trace_start"() <{level = 10 : i32, message = "bqd,bkd->bqk"}> : () -> ()
    %cst_12 = arith.constant dense<0.000000e+00> : vector<8x8x8xf32>
    %77 = tpu.matmul %42, %59, %cst_12 {dimension_numbers = #tpu.dot_dimension_numbers<[2], [2], [1], [1], [0, 0, 0, 1, 1, 1], [0], [0]>} : vector<8x8x8xf32>, vector<8x8x8xf32>, vector<8x8x8xf32> -> vector<8x8x8xf32>
    "tpu.trace_stop"() : () -> ()
    %cst_13 = arith.constant dense<0xFF800000> : vector<8x8xf32>
    %78 = vector.multi_reduction <maximumf>, %77, %cst_13 [2] : vector<8x8x8xf32> to vector<8x8xf32>
    %79 = vector.shape_cast %78 : vector<8x8xf32> to vector<8x8x1xf32>
    %80 = vector.broadcast %79 : vector<8x8x1xf32> to vector<8x8x8xf32>
    %81 = arith.subf %77, %80 : vector<8x8x8xf32>
    %82 = math.exp %81 : vector<8x8x8xf32>
    %cst_14 = arith.constant dense<0.000000e+00> : vector<8x8xf32>
    %83 = vector.multi_reduction <add>, %82, %cst_14 [2] : vector<8x8x8xf32> to vector<8x8xf32>
    %84 = vector.shape_cast %83 : vector<8x8xf32> to vector<8x8x1xf32>
    %85 = vector.broadcast %84 : vector<8x8x1xf32> to vector<8x8x8xf32>
    %86 = arith.divf %82, %85 : vector<8x8x8xf32>
    "tpu.trace_start"() <{level = 10 : i32, message = "bqk,bkd->bqd"}> : () -> ()
    %cst_15 = arith.constant dense<0.000000e+00> : vector<8x8x8xf32>
    %87 = tpu.matmul %86, %76, %cst_15 {dimension_numbers = #tpu.dot_dimension_numbers<[2], [1], [1], [2], [0, 0, 0, 1, 1, 2], [0], [0]>} : vector<8x8x8xf32>, vector<8x8x8xf32>, vector<8x8x8xf32> -> vector<8x8x8xf32>
    "tpu.trace_stop"() : () -> ()
    %88 = vector.extract_strided_slice %87 {offsets = [0, 0, 0], sizes = [1, 8, 8], strides = [1, 1, 1]} : vector<8x8x8xf32> to vector<1x8x8xf32>
    %89 = vector.shape_cast %88 : vector<1x8x8xf32> to vector<8x8xf32>
    %90 = vector.extract_strided_slice %87 {offsets = [1, 0, 0], sizes = [1, 8, 8], strides = [1, 1, 1]} : vector<8x8x8xf32> to vector<1x8x8xf32>
    %91 = vector.shape_cast %90 : vector<1x8x8xf32> to vector<8x8xf32>
    %92 = vector.extract_strided_slice %87 {offsets = [2, 0, 0], sizes = [1, 8, 8], strides = [1, 1, 1]} : vector<8x8x8xf32> to vector<1x8x8xf32>
    %93 = vector.shape_cast %92 : vector<1x8x8xf32> to vector<8x8xf32>
    %94 = vector.extract_strided_slice %87 {offsets = [3, 0, 0], sizes = [1, 8, 8], strides = [1, 1, 1]} : vector<8x8x8xf32> to vector<1x8x8xf32>
    %95 = vector.shape_cast %94 : vector<1x8x8xf32> to vector<8x8xf32>
    %96 = tpu.concatenate %89, %91, %93, %95 in 1 : vector<8x8xf32>, vector<8x8xf32>, vector<8x8xf32>, vector<8x8xf32> -> vector<8x32xf32>
    %97 = vector.extract_strided_slice %87 {offsets = [4, 0, 0], sizes = [1, 8, 8], strides = [1, 1, 1]} : vector<8x8x8xf32> to vector<1x8x8xf32>
    %98 = vector.shape_cast %97 : vector<1x8x8xf32> to vector<8x8xf32>
    %99 = vector.extract_strided_slice %87 {offsets = [5, 0, 0], sizes = [1, 8, 8], strides = [1, 1, 1]} : vector<8x8x8xf32> to vector<1x8x8xf32>
    %100 = vector.shape_cast %99 : vector<1x8x8xf32> to vector<8x8xf32>
    %101 = vector.extract_strided_slice %87 {offsets = [6, 0, 0], sizes = [1, 8, 8], strides = [1, 1, 1]} : vector<8x8x8xf32> to vector<1x8x8xf32>
    %102 = vector.shape_cast %101 : vector<1x8x8xf32> to vector<8x8xf32>
    %103 = vector.extract_strided_slice %87 {offsets = [7, 0, 0], sizes = [1, 8, 8], strides = [1, 1, 1]} : vector<8x8x8xf32> to vector<1x8x8xf32>
    %104 = vector.shape_cast %103 : vector<1x8x8xf32> to vector<8x8xf32>
    %105 = tpu.concatenate %98, %100, %102, %104 in 1 : vector<8x8xf32>, vector<8x8xf32>, vector<8x8xf32>, vector<8x8xf32> -> vector<8x32xf32>
    %106 = tpu.concatenate %96, %105 in 0 : vector<8x32xf32>, vector<8x32xf32> -> vector<16x32xf32>
    %c0_16 = arith.constant 0 : index
    %c0_17 = arith.constant 0 : index
    %107 = vector.load %arg5[%c0_16, %c0_17] : memref<32x32xf32, #tpu.memory_space<vmem>>, vector<32x32xf32>
    %cst_18 = arith.constant dense<0.000000e+00> : vector<16x32xf32>
    %108 = tpu.matmul %106, %107, %cst_18 {dimension_numbers = #tpu.dot_dimension_numbers<[1], [0], [0], [1], [0, 0, 1, 1], [], []>} : vector<16x32xf32>, vector<32x32xf32>, vector<16x32xf32> -> vector<16x32xf32>
    %109 = vector.broadcast %5 : vector<1x32xf32> to vector<16x32xf32>
    %110 = arith.addf %108, %109 : vector<16x32xf32>
    %111 = arith.addf %110, %0 : vector<16x32xf32>
    %cst_19 = arith.constant dense<0.000000e+00> : vector<16xf32>
    %112 = vector.multi_reduction <add>, %111, %cst_19 [1] : vector<16x32xf32> to vector<16xf32>
    %113 = vector.shape_cast %112 : vector<16xf32> to vector<16x1xf32>
    %cst_20 = arith.constant 3.200000e+01 : f32
    %114 = vector.broadcast %cst_20 : f32 to vector<16x1xf32>
    %115 = arith.divf %113, %114 : vector<16x1xf32>
    %116 = arith.mulf %111, %111 : vector<16x32xf32>
    %cst_21 = arith.constant dense<0.000000e+00> : vector<16xf32>
    %117 = vector.multi_reduction <add>, %116, %cst_21 [1] : vector<16x32xf32> to vector<16xf32>
    %118 = vector.shape_cast %117 : vector<16xf32> to vector<16x1xf32>
    %cst_22 = arith.constant 3.200000e+01 : f32
    %119 = vector.broadcast %cst_22 : f32 to vector<16x1xf32>
    %120 = arith.divf %118, %119 : vector<16x1xf32>
    %121 = arith.mulf %115, %115 : vector<16x1xf32>
    %122 = arith.subf %120, %121 : vector<16x1xf32>
    %123 = vector.broadcast %115 : vector<16x1xf32> to vector<16x32xf32>
    %124 = arith.subf %111, %123 : vector<16x32xf32>
    %cst_23 = arith.constant 9.99999974E-6 : f32
    %125 = vector.broadcast %cst_23 : f32 to vector<16x1xf32>
    %126 = arith.addf %122, %125 : vector<16x1xf32>
    %127 = math.rsqrt %126 : vector<16x1xf32>
    %128 = vector.broadcast %127 : vector<16x1xf32> to vector<16x32xf32>
    %129 = arith.mulf %124, %128 : vector<16x32xf32>
    %130 = vector.broadcast %6 : vector<1x32xf32> to vector<16x32xf32>
    %131 = arith.mulf %129, %130 : vector<16x32xf32>
    %132 = vector.broadcast %7 : vector<1x32xf32> to vector<16x32xf32>
    %133 = arith.addf %131, %132 : vector<16x32xf32>
    %c0_24 = arith.constant 0 : index
    %c0_25 = arith.constant 0 : index
    %134 = vector.load %arg6[%c0_24, %c0_25] : memref<32x64xf32, #tpu.memory_space<vmem>>, vector<32x64xf32>
    %cst_26 = arith.constant dense<0.000000e+00> : vector<16x64xf32>
    %135 = tpu.matmul %133, %134, %cst_26 {dimension_numbers = #tpu.dot_dimension_numbers<[1], [0], [0], [1], [0, 0, 1, 1], [], []>} : vector<16x32xf32>, vector<32x64xf32>, vector<16x64xf32> -> vector<16x64xf32>
    %136 = vector.broadcast %8 : vector<1x64xf32> to vector<16x64xf32>
    %137 = arith.addf %135, %136 : vector<16x64xf32>
    %cst_27 = arith.constant 0.000000e+00 : f32
    %138 = vector.broadcast %cst_27 : f32 to vector<16x64xf32>
    %139 = arith.maximumf %137, %138 : vector<16x64xf32>
    %c0_28 = arith.constant 0 : index
    %c0_29 = arith.constant 0 : index
    %140 = vector.load %arg7[%c0_28, %c0_29] : memref<64x32xf32, #tpu.memory_space<vmem>>, vector<64x32xf32>
    %cst_30 = arith.constant dense<0.000000e+00> : vector<16x32xf32>
    %141 = tpu.matmul %139, %140, %cst_30 {dimension_numbers = #tpu.dot_dimension_numbers<[1], [0], [0], [1], [0, 0, 1, 1], [], []>} : vector<16x64xf32>, vector<64x32xf32>, vector<16x32xf32> -> vector<16x32xf32>
    %142 = vector.broadcast %9 : vector<1x32xf32> to vector<16x32xf32>
    %143 = arith.addf %141, %142 : vector<16x32xf32>
    %144 = arith.addf %143, %133 : vector<16x32xf32>
    %cst_31 = arith.constant dense<0.000000e+00> : vector<16xf32>
    %145 = vector.multi_reduction <add>, %144, %cst_31 [1] : vector<16x32xf32> to vector<16xf32>
    %146 = vector.shape_cast %145 : vector<16xf32> to vector<16x1xf32>
    %cst_32 = arith.constant 3.200000e+01 : f32
    %147 = vector.broadcast %cst_32 : f32 to vector<16x1xf32>
    %148 = arith.divf %146, %147 : vector<16x1xf32>
    %149 = arith.mulf %144, %144 : vector<16x32xf32>
    %cst_33 = arith.constant dense<0.000000e+00> : vector<16xf32>
    %150 = vector.multi_reduction <add>, %149, %cst_33 [1] : vector<16x32xf32> to vector<16xf32>
    %151 = vector.shape_cast %150 : vector<16xf32> to vector<16x1xf32>
    %cst_34 = arith.constant 3.200000e+01 : f32
    %152 = vector.broadcast %cst_34 : f32 to vector<16x1xf32>
    %153 = arith.divf %151, %152 : vector<16x1xf32>
    %154 = arith.mulf %148, %148 : vector<16x1xf32>
    %155 = arith.subf %153, %154 : vector<16x1xf32>
    %156 = vector.broadcast %148 : vector<16x1xf32> to vector<16x32xf32>
    %157 = arith.subf %144, %156 : vector<16x32xf32>
    %cst_35 = arith.constant 9.99999974E-6 : f32
    %158 = vector.broadcast %cst_35 : f32 to vector<16x1xf32>
    %159 = arith.addf %155, %158 : vector<16x1xf32>
    %160 = math.rsqrt %159 : vector<16x1xf32>
    %161 = vector.broadcast %160 : vector<16x1xf32> to vector<16x32xf32>
    %162 = arith.mulf %157, %161 : vector<16x32xf32>
    %163 = vector.broadcast %10 : vector<1x32xf32> to vector<16x32xf32>
    %164 = arith.mulf %162, %163 : vector<16x32xf32>
    %165 = vector.broadcast %11 : vector<1x32xf32> to vector<16x32xf32>
    %166 = arith.addf %164, %165 : vector<16x32xf32>
    %c0_36 = arith.constant 0 : index
    %c0_37 = arith.constant 0 : index
    %167 = vector.load %arg9[%c0_36, %c0_37] : memref<16x32xf32, #tpu.memory_space<vmem>>, vector<16x32xf32>
    tpu.vector_store %arg9[%c0_36, %c0_37], %166 {strides = array<i32>} : memref<16x32xf32, #tpu.memory_space<vmem>>, vector<16x32xf32>,
    return
  }
  func.func @transform_0(%arg0: i32) -> (i32, i32) {
    %c0_i32 = arith.constant 0 : i32
    %c0_i32_0 = arith.constant 0 : i32
    return %arg0, %c0_i32 : i32, i32
  }
  func.func @transform_1(%arg0: i32) -> (i32, i32) {
    %c0_i32 = arith.constant 0 : i32
    %c0_i32_0 = arith.constant 0 : i32
    %c0_i32_1 = arith.constant 0 : i32
    return %c0_i32, %c0_i32_0 : i32, i32
  }
  func.func @transform_2(%arg0: i32) -> (i32, i32) {
    %c0_i32 = arith.constant 0 : i32
    %c0_i32_0 = arith.constant 0 : i32
    %c0_i32_1 = arith.constant 0 : i32
    return %c0_i32, %c0_i32_0 : i32, i32
  }
  func.func @transform_3(%arg0: i32) -> (i32, i32) {
    %c0_i32 = arith.constant 0 : i32
    %c0_i32_0 = arith.constant 0 : i32
    %c0_i32_1 = arith.constant 0 : i32
    return %c0_i32, %c0_i32_0 : i32, i32
  }
  func.func @transform_4(%arg0: i32) -> (i32, i32) {
    %c0_i32 = arith.constant 0 : i32
    %c0_i32_0 = arith.constant 0 : i32
    %c0_i32_1 = arith.constant 0 : i32
    return %c0_i32, %c0_i32_0 : i32, i32
  }
  func.func @transform_5(%arg0: i32) -> (i32, i32) {
    %c0_i32 = arith.constant 0 : i32
    %c0_i32_0 = arith.constant 0 : i32
    %c0_i32_1 = arith.constant 0 : i32
    return %c0_i32, %c0_i32_0 : i32, i32
  }
  func.func @transform_6(%arg0: i32) -> (i32, i32) {
    %c0_i32 = arith.constant 0 : i32
    %c0_i32_0 = arith.constant 0 : i32
    %c0_i32_1 = arith.constant 0 : i32
    return %c0_i32, %c0_i32_0 : i32, i32
  }
  func.func @transform_7(%arg0: i32) -> (i32, i32) {
    %c0_i32 = arith.constant 0 : i32
    %c0_i32_0 = arith.constant 0 : i32
    %c0_i32_1 = arith.constant 0 : i32
    return %c0_i32, %c0_i32_0 : i32, i32
  }
  func.func @transform_8(%arg0: i32) -> (i32, i32) {
    %c0_i32 = arith.constant 0 : i32
    %c0_i32_0 = arith.constant 0 : i32
    return %arg0, %c0_i32 : i32, i32
  }
}

</mosaic_0001>

<bundles_post_ra>
// kernel: tpu_custom_call.1
= control target key start
LH: loop header
LB: loop body
LE: loop exit
PB: predicated region body
PF: predicated region fallthrough
CT: control target
= control target key end

     0   :  { %13 = vsyncpa [#allocation3], 0  ;;  %s2839_s0 = inlined_call_operand.hbm [shape: f32[16,32], index: 0, kind: input, shape index: {}]   ;;  %s2840_s1 = inlined_call_operand.vmem [shape: f32[32,32], index: 1, kind: input, shape index: {}]   ;;  %s2841_s2 = inlined_call_operand.vmem [shape: f32[32,32], index: 2, kind: input, shape index: {}]   ;;  %s2842_s3 = inlined_call_operand.vmem [shape: f32[32,32], index: 3, kind: input, shape index: {}]   ;;  %s2843_s4 = inlined_call_operand.hbm [shape: f32[32,32], index: 4, kind: input, shape index: {}]   ;;  %s2844_s5 = inlined_call_operand.hbm [shape: f32[32,64], index: 5, kind: input, shape index: {}]   ;;  %s2845_s6 = inlined_call_operand.vmem [shape: f32[64,32], index: 6, kind: input, shape index: {}]   ;;  %s2846_s7 = inlined_call_operand.hbm [shape: f32[10,64], index: 7, kind: input, shape index: {}]   ;;  %s2847_s8 = inlined_call_operand.hbm [shape: f32[16,32], index: 8, kind: output, shape index: {}]  }
   0x1   :  { %14 = vsyncpa [#allocation6], 0 }
   0x2   :  { %15 = vsyncpa [#allocation9], 0 }
   0x3   :  { %16 = vsyncpa [#allocation4], 0  ;;  %s2500_s27 = smov [#allocation5]   ;;  %s2501_s29 = smov [#allocation2]  }
   0x4   :  { %s40_s28 = sshll.u32 %s2500_s27, 4  ;;  %s22_s30 = sshll.u32 %s2501_s29, 4  ;;  %s41_s28 = int_to_ptr.vmem [resolvable:$true] %s40_s28  ;;  %s23_s30 = int_to_ptr.vmem [resolvable:$true] %s22_s30 }
   0x5   :  { %s2400_s9 = scalar_lea.vmem %s41_s28, 512  ;;  %p2405_p1 = scmp.lt.s32.totalorder %s41_s28, %s41_s28 }
   0x6   :  { %p2401_p0 = scmp.ne.s32.totalorder %s41_s28, %s2400_s9  ;;  %p2406_p2 = scmp.lt.s32.totalorder %s2400_s9, %s2400_s9 }
   0x8   :  { %p2407_p3 = por %p2406_p2, %p2405_p1 }
   0xa   :  { %p2408_p4 = pnand %p2407_p3, %p2401_p0 }
   0xc   :  { %2411 = shalt.err (!%p2408_p4)
}
   0xd   :  { %s2502_s10 = smov 128   ;;  %s2503_s11 = smov 8  }
   0xe   :  { %46 = dma.hbm_to_vmem [thread:$0]  %s2843_s4, 512, %s41_s28, [#allocation6], %s2502_s10, %s2502_s10, %s2503_s11  }
   0xf   :  { %s2420_s14 = scalar_lea.vmem %s23_s30, 256  ;;  %p2425_p6 = scmp.lt.s32.totalorder %s23_s30, %s23_s30 }
  0x10   :  { %p2421_p5 = scmp.ne.s32.totalorder %s23_s30, %s2420_s14  ;;  %p2426_p7 = scmp.lt.s32.totalorder %s2420_s14, %s2420_s14 }
  0x12   :  { %p2427_p8 = por %p2426_p7, %p2425_p6 }
  0x14   :  { %p2428_p9 = pnand %p2427_p8, %p2421_p5 }
  0x16   :  { %2431 = shalt.err (!%p2428_p9)
}
  0x17   :  { %28 = dma.hbm_to_vmem [thread:$0]  %s2839_s0, 256, %s23_s30, [#allocation3], %s2502_s10, %s2502_s10, %s2503_s11  }
  0x18   :  { %s2504_s17 = smov [#allocation7]   ;;  %s2505_s19 = smov [#allocation8]  }
  0x19   :  { %s52_s18 = sshll.u32 %s2504_s17, 4  ;;  %s66_s20 = sshll.u32 %s2505_s19, 4  ;;  %s53_s18 = int_to_ptr.vmem [resolvable:$true] %s52_s18  ;;  %s67_s20 = int_to_ptr.vmem [resolvable:$true] %s66_s20 }
  0x1a   :  { %s2440_s4 = scalar_lea.vmem %s53_s18, 512  ;;  %p2445_p11 = scmp.lt.s32.totalorder %s53_s18, %s53_s18 }
  0x1b   :  { %p2441_p10 = scmp.ne.s32.totalorder %s53_s18, %s2440_s4  ;;  %p2446_p12 = scmp.lt.s32.totalorder %s2440_s4, %s2440_s4 }
  0x1d   :  { %p2447_p13 = por %p2446_p12, %p2445_p11 }
  0x1f   :  { %p2448_p0 = pnand %p2447_p13, %p2441_p10 }
  0x21   :  { %2451 = shalt.err (!%p2448_p0)
}
  0x22   :  { %58 = dma.hbm_to_vmem [thread:$0]  %s2844_s5, 512, %s53_s18, [#allocation6], %s2502_s10, %s2502_s10, %s2503_s11  }
  0x23   :  { %s2460_s0 = scalar_lea.vmem %s67_s20, 256  ;;  %p2465_p2 = scmp.lt.s32.totalorder %s67_s20, %s67_s20 }
  0x24   :  { %p2461_p1 = scmp.ne.s32.totalorder %s67_s20, %s2460_s0  ;;  %p2466_p3 = scmp.lt.s32.totalorder %s2460_s0, %s2460_s0 }
  0x26   :  { %p2467_p4 = por %p2466_p3, %p2465_p2 }
  0x28   :  { %p2468_p5 = pnand %p2467_p4, %p2461_p1 }
  0x2a   :  { %2471 = shalt.err (!%p2468_p5)
}
  0x2b   :  { %72 = dma.hbm_to_vmem [thread:$0]  %s2846_s7, 256, %s67_s20, [#allocation9], %s2502_s10, %s2502_s10, %s2503_s11  }
  0x2c   :  { %2492 = dma.done.wait [#allocation3], 256  }
  0x2d   :  { %2493 = vsyncadd [#allocation3], 4294967040 }
  0x2e   :  { %2494 = dma.done.wait [#allocation6], 1024  }
  0x2f   :  { %2495 = vsyncadd [#allocation6], 4294966272 }
  0x30   :  { %2496 = dma.done.wait [#allocation9], 256  }
  0x31   :  { %2497 = vsyncadd [#allocation9], 4294967040  ;;  %vm97_vm0 = vcmask 261120   ;;  %v92_v0 = vld [vmem:[%s2840_s1 + $0x18] sm:$0xff]  ;;  %v91_v1 = vld [vmem:[%s2840_s1 + $0x10] sm:$0xff]  ;;  %v2506_v10 = vmov 0.0   ;;  %v93_v13 = vlaneseq }
  0x32   :  { %2184 = vmatprep.subr.mxu1 %v92_v0  ;;  %v2589_v2 = vld [vmem:[#allocation2] sm:$0xff]  ;;  %v90_v3 = vld [vmem:[%s2840_s1 + $0x8] sm:$0xff]  ;;  %v184_v6 = vld [vmem:[%s2841_s2 + $0x18] sm:$0xff]  ;;  %vm2507_vm1 = vmmov 0   ;;  %s2509_s23 = smov 120   ;;  %vm395_vm2 = vcmask 64512  }
  0x33   :  { %2185 = vmatpush3.msra.mxu1 %v92_v0  ;;  %2192 = vmatprep.mubr.msk.f32.mxu1 %vm97_vm0, %v2589_v2  ;;  %v89_v4 = vld [vmem:[%s2840_s1] sm:$0xff]  ;;  %v2601_v5 = vld [vmem:[#allocation2 + $0x8] sm:$0xff]  ;;  %v183_v7 = vld [vmem:[%s2841_s2 + $0x10] sm:$0xff]  ;;  %v2630_v14 = vshrl.u32 %v93_v13, 7  ;;  %s2510_s24 = smov 112   ;;  %s2511_s5 = smov 16  }
  0x34   :  { %2186 = vmatprep.subr.mxu1 %v91_v1  ;;  %2214 = vmatprep.mubr.msk.f32.mxu0 %vm97_vm0, %v2589_v2  ;;  %v182_v8 = vld [vmem:[%s2841_s2 + $0x8] sm:$0xff]  ;;  %v181_v9 = vld [vmem:[%s2841_s2] sm:$0xff]  ;;  %v267_v11 = vld [vmem:[%s2842_s3 + $0x18] sm:$0xff]  ;;  %s2512_s25 = smov 24   ;;  %vm1673_vm3 = vcmask 130048   ;;  %vm1675_vm4 = vcmask 195584  }
  0x35   :  { %2187 = vmatpush3.msra.mxu1 %v91_v1  ;;  %v266_v12 = vld [vmem:[%s2842_s3 + $0x10] sm:$0xff]  ;;  %2206 = vmatprep.subr.mxu0 %v267_v11  ;;  %v265_v15 = vld [vmem:[%s2842_s3 + $0x8] sm:$0xff]  ;;  %v264_v16 = vld [vmem:[%s2842_s3] sm:$0xff]  ;;  %v95_v17 = vsub.s32 0, %v2630_v14  ;;  %v187_v24 = vsub.s32 1, %v2630_v14  ;;  %s2508_s3 = smov 104  }
  0x36   :  { %2188 = vmatprep.subr.mxu1 %v90_v3  ;;  %2207 = vmatpush3.msra.mxu0 %v267_v11  ;;  %v2639_v18 = vld [vmem:[#allocation8] sm:$0xff]  ;;  %v270_v44 = vsub.s32 2, %v2630_v14  ;;  %vm1929_vm5 = vcmask 523264  }
  0x37   :  { %2189 = vmatpush3.msra.mxu1 %v90_v3  ;;  %2208 = vmatprep.subr.mxu0 %v266_v12  ;;  %v96_v19 = vrot.slane %v2639_v18, %v95_v17  ;;  %v188_v26 = vrot.slane %v2639_v18, %v187_v24 }
  0x38   :  { %2190 = vmatprep.subr.mxu1 %v89_v4  ;;  %2209 = vmatpush3.msra.mxu0 %v266_v12  ;;  %v271_v45 = vrot.slane %v2639_v18, %v270_v44 }
  0x39   :  { %2191 = vmatpush3.msra.mxu1 %v89_v4  ;;  %2210 = vmatprep.subr.mxu0 %v265_v15 }
  0x3a   :  { %2193 = vmatmul.mubr.msk.f32.vlgmr.msra.gmra.mxu1 %vm97_vm0, %v2601_v5  ;;  %2195 = vmatprep.subr.mxu1 %v184_v6 }
  0x3b   :  { %2196 = vmatpush3.msra.mxu1 %v184_v6  ;;  %2203 = vmatprep.mubr.msk.f32.mxu1 %vm97_vm0, %v2589_v2 }
  0x3c   :  { %2197 = vmatprep.subr.mxu1 %v183_v7  ;;  %2211 = vmatpush3.msra.mxu0 %v265_v15 }
  0x3d   :  { %2198 = vmatpush3.msra.mxu1 %v183_v7  ;;  %2212 = vmatprep.subr.mxu0 %v264_v16 }
  0x3e   :  { %2199 = vmatprep.subr.mxu1 %v182_v8  ;;  %2213 = vmatpush3.msra.mxu0 %v264_v16 }
  0x3f   :  { %2200 = vmatpush3.msra.mxu1 %v182_v8  ;;  %2215 = vmatmul.mubr.msk.f32.vlgmr.msra.gmra.mxu0 %vm97_vm0, %v2601_v5 }
  0x40   :  { %2201 = vmatprep.subr.mxu1 %v181_v9  ;;  %2227 = vmatprep.subr.mxu0 %v2506_v10 }
  0x41   :  { %2202 = vmatpush3.msra.mxu1 %v181_v9  ;;  %2229 = vmatprep.mubr.msk.f32.mxu0 %vm2507_vm1, %v2506_v10 }
  0x42   :  { %2204 = vmatmul.mubr.msk.f32.vlgmr.msra.gmra.mxu1 %vm97_vm0, %v2601_v5  ;;  %2217 = vmatprep.subr.mxu1 %v2506_v10 }
  0x43   :  { %2219 = vmatprep.mubr.msk.f32.mxu1 %vm2507_vm1, %v2506_v10 }
  0xfa   :  { %v2194_v20 = vpop.f32.mrf.mxu1 }
  0xfb   :  { %v176_v29 = vadd.f32 %v2194_v20, %v96_v19 }
  0xfc   :  { %v170_v21 = vpop.f32.mrf.mxu1 }
  0xfd   :  { %v171_v22 = vadd.f32 %v170_v21, %v96_v19  ;;  %v180_v30 = vmul.f32 0.35355338, %v176_v29 }
  0xff   :  { %v179_v23 = vmul.f32 0.35355338, %v171_v22  ;;  %v2216_v46 = vpop.f32.mrf.mxu0 }
 0x100   :  { %v2707_v47 = vadd.f32 %v2216_v46, %v271_v45 }
 0x101   :  { %352 = vrot.lane.b32.xlu1 %v179_v23, %s2508_s3  ;;  %348 = vrot.lane.b32.xlu0 %v179_v23, %s2509_s23  ;;  %v338_v48 = vpop.f32.mrf.mxu0 }
 0x102   :  { %v2205_v25 = vpop.f32.mrf.mxu1  ;;  %v339_v49 = vadd.f32 %v338_v48, %v271_v45 }
 0x103   :  { %v261_v31 = vadd.f32 %v2205_v25, %v188_v26 }
 0x104   :  { %v255_v27 = vpop.f32.mrf.mxu1 }
 0x105   :  { %v256_v28 = vadd.f32 %v255_v27, %v188_v26 }
 0x107   :  { %2218 = vmatpush3.xpose.msk.msra.mxu1 %vm395_vm2, %v256_v28  ;;  %364 = vrot.lane.b32.xlu1 %v256_v28, %s2510_s24 }
 0x108   :  { %362 = vrot.lane.b32.xlu0 %v256_v28, %s2509_s23  ;;  %2222 = vmatprep.subr.mxu1 %v2506_v10 }
 0x10a   :  { %2220 = vmatmul.mubr.msk.f32.vlgmr.msra.gmra.mxu1 %vm395_vm2, %v179_v23 }
 0x10b   :  { %366 = vrot.lane.b32.xlu1 %v256_v28, %s2508_s3  ;;  %2224 = vmatprep.mubr.msk.f32.mxu1 %vm2507_vm1, %v2506_v10 }
 0x10c   :  { %350 = vrot.lane.b32.xlu0 %v179_v23, %s2510_s24 }
 0x10f   :  { %355 = vrot.lane.b32.xlu1 %v180_v30, %s2509_s23 }
 0x110   :  { %369 = vrot.lane.b32.xlu0 %v261_v31, %s2509_s23 }
 0x113   :  { %373 = vrot.lane.b32.xlu1 %v261_v31, %s2508_s3 }
 0x114   :  { %371 = vrot.lane.b32.xlu0 %v261_v31, %s2510_s24 }
 0x117   :  { %359 = vrot.lane.b32.xlu1 %v180_v30, %s2508_s3 }
 0x118   :  { %357 = vrot.lane.b32.xlu0 %v180_v30, %s2510_s24 }
 0x173   :  { %v353_v32 = vpop.permute.xlu1 %352  ;;  %v349_v33 = vpop.permute.xlu0 %348 }
 0x179   :  { %v365_v34 = vpop.permute.xlu1 %364 }
 0x17a   :  { %v363_v35 = vpop.permute.xlu0 %362  ;;  %2228 = vmatpush3.xpose.msk.msra.mxu0 %vm395_vm2, %v365_v34 }
 0x17b   :  { %2223 = vmatpush3.xpose.msk.msra.mxu1 %vm395_vm2, %v363_v35  ;;  %2237 = vmatprep.subr.mxu0 %v2506_v10 }
 0x17c   :  { %2232 = vmatprep.subr.mxu1 %v2506_v10 }
 0x17d   :  { %v367_v36 = vpop.permute.xlu1 %366 }
 0x17e   :  { %v351_v37 = vpop.permute.xlu0 %350  ;;  %2225 = vmatmul.mubr.msk.f32.vlgmr.msra.gmra.mxu1 %vm395_vm2, %v349_v33 }
 0x17f   :  { %2230 = vmatmul.mubr.msk.f32.vlgmr.msra.gmra.mxu0 %vm395_vm2, %v351_v37  ;;  %2233 = vmatpush3.xpose.msk.msra.mxu1 %vm395_vm2, %v367_v36 }
 0x180   :  { %2238 = vmatpush3.xpose.msk.msra.mxu0 %vm395_vm2, %v261_v31  ;;  %2234 = vmatprep.mubr.msk.f32.mxu1 %vm2507_vm1, %v2506_v10 }
 0x181   :  { %v356_v38 = vpop.permute.xlu1 %355  ;;  %2239 = vmatprep.mubr.msk.f32.mxu0 %vm2507_vm1, %v2506_v10  ;;  %2242 = vmatprep.subr.mxu1 %v2506_v10 }
 0x182   :  { %v370_v39 = vpop.permute.xlu0 %369  ;;  %2235 = vmatmul.mubr.msk.f32.vlgmr.msra.gmra.mxu1 %vm395_vm2, %v353_v32  ;;  %2247 = vmatprep.subr.mxu0 %v2506_v10 }
 0x183   :  { %2240 = vmatmul.mubr.msk.f32.vlgmr.msra.gmra.mxu0 %vm395_vm2, %v180_v30  ;;  %2243 = vmatpush3.xpose.msk.msra.mxu1 %vm395_vm2, %v370_v39 }
 0x184   :  { %2244 = vmatprep.mubr.msk.f32.mxu1 %vm2507_vm1, %v2506_v10  ;;  %2252 = vmatprep.subr.mxu1 %v2506_v10 }
 0x185   :  { %v374_v40 = vpop.permute.xlu1 %373  ;;  %2249 = vmatprep.mubr.msk.f32.mxu0 %vm2507_vm1, %v2506_v10 }
 0x186   :  { %v372_v41 = vpop.permute.xlu0 %371  ;;  %2245 = vmatmul.mubr.msk.f32.vlgmr.msra.gmra.mxu1 %vm395_vm2, %v356_v38 }
 0x187   :  { %2248 = vmatpush3.xpose.msk.msra.mxu0 %vm395_vm2, %v372_v41  ;;  %2253 = vmatpush3.xpose.msk.msra.mxu1 %vm395_vm2, %v374_v40 }
 0x188   :  { %2254 = vmatprep.mubr.msk.f32.mxu1 %vm2507_vm1, %v2506_v10  ;;  %2257 = vmatprep.subr.mxu0 %v2506_v10 }
 0x189   :  { %v360_v42 = vpop.permute.xlu1 %359  ;;  %2262 = vmatprep.subr.mxu1 %v2506_v10 }
 0x18a   :  { %v358_v43 = vpop.permute.xlu0 %357  ;;  %2255 = vmatmul.mubr.msk.f32.vlgmr.msra.gmra.mxu1 %vm395_vm2, %v360_v42 }
 0x18b   :  { %2250 = vmatmul.mubr.msk.f32.vlgmr.msra.gmra.mxu0 %vm395_vm2, %v358_v43  ;;  %2264 = vmatprep.mubr.msk.f32.mxu1 %vm2507_vm1, %v2506_v10 }
 0x18c   :  { %2259 = vmatprep.mubr.msk.f32.mxu0 %vm2507_vm1, %v2506_v10  ;;  %2258 = vmatpush3.msra.mxu0 %v339_v49 }
 0x18d   :  { %2267 = vmatprep.subr.mxu0 %v2506_v10 }
 0x1ca   :  { %v466_v50 = vpop.f32.mrf.mxu1 }
 0x1cb   :  { %v988_v51 = vsel %vm395_vm2, %v466_v50, -inf }
 0x1cc   :  { %989 = vmax.xlane.f32.xlu0 %v988_v51  ;;  %v2221_v52 = vpop.f32.mrf.mxu1 }
 0x23e   :  { %v540_v53 = vpop.f32.mrf.mxu1 }
 0x23f   :  { %v614_v54 = vpop.f32.mrf.mxu0  ;;  %v991_v55 = vsel %vm395_vm2, %v540_v53, -inf }
 0x240   :  { %992 = vmax.xlane.f32.xlu1 %v991_v55  ;;  %v2226_v56 = vpop.f32.mrf.mxu1  ;;  %v994_v57 = vsel %vm395_vm2, %v614_v54, -inf }
 0x241   :  { %v2231_v58 = vpop.f32.mrf.mxu0  ;;  %995 = vmax.xlane.f32.xlu0 %v994_v57 }
 0x242   :  { %v688_v59 = vpop.f32.mrf.mxu1 }
 0x243   :  { %v762_v60 = vpop.f32.mrf.mxu0  ;;  %v997_v61 = vsel %vm395_vm2, %v688_v59, -inf }
 0x244   :  { %v2236_v62 = vpop.f32.mrf.mxu1  ;;  %v1000_v63 = vsel %vm395_vm2, %v762_v60, -inf }
 0x245   :  { %v2241_v0 = vpop.f32.mrf.mxu0  ;;  %1001 = vmax.xlane.f32.xlu1 %v1000_v63  ;;  %998 = vmax.xlane.f32.xlu0 %v997_v61 }
 0x246   :  { %v836_v1 = vpop.f32.mrf.mxu1 }
 0x247   :  { %v1003_v3 = vsel %vm395_vm2, %v836_v1, -inf }
 0x248   :  { %v2246_v4 = vpop.f32.mrf.mxu1 }
 0x249   :  { %1004 = vmax.xlane.f32.xlu0 %v1003_v3 }
 0x24a   :  { %v984_v6 = vpop.f32.mrf.mxu1 }
 0x24b   :  { %v910_v7 = vpop.f32.mrf.mxu0  ;;  %v1009_v8 = vsel %vm395_vm2, %v984_v6, -inf }
 0x24c   :  { %v1006_v9 = vsel %vm395_vm2, %v910_v7, -inf  ;;  %v2256_v11 = vpop.f32.mrf.mxu1 }
 0x24d   :  { %v2251_v12 = vpop.f32.mrf.mxu0  ;;  %1007 = vmax.xlane.f32.xlu1 %v1006_v9  ;;  %1010 = vmax.xlane.f32.xlu0 %v1009_v8 }
 0x255   :  { %v990_v13 = vpop.xlane.xlu0 %989 }
 0x256   :  { %v1012_v15 = vsub.f32 %v466_v50, %v990_v13 }
 0x258   :  { %v1020_v16 = vmul.f32 1.442695, %v1012_v15 }
 0x25a   :  { %2352 = vpow2.f32 %v1020_v16 }
 0x25e   :  { %376 = vrot.lane.b32.xlu1 %v339_v49, %s2509_s23 }
 0x262   :  { %382 = vrot.lane.b32.xlu1 %v339_v49, %s2508_s3 }
 0x263   :  { %379 = vrot.lane.b32.xlu0 %v339_v49, %s2510_s24 }
 0x266   :  { %386 = vrot.lane.b32.xlu1 %v2707_v47, %s2509_s23 }
 0x267   :  { %v2353_v19 = vpop.eup %2352 }
 0x268   :  { %v1036_v20 = vsel %vm395_vm2, %v2353_v19, 0.0 }
 0x28a   :  { %1037 = vadd.xlane.f32.xlu1 %v1036_v20 }
 0x2c9   :  { %v993_v21 = vpop.xlane.xlu1 %992 }
 0x2ca   :  { %v1013_v22 = vsub.f32 %v540_v53, %v993_v21  ;;  %v996_v23 = vpop.xlane.xlu0 %995 }
 0x2cb   :  { %v1014_v25 = vsub.f32 %v614_v54, %v996_v23 }
 0x2cc   :  { %v1022_v26 = vmul.f32 1.442695, %v1013_v22 }
 0x2cd   :  { %v1024_v27 = vmul.f32 1.442695, %v1014_v25 }
 0x2ce   :  { %2354 = vpow2.f32 %v1022_v26  ;;  %v1002_v28 = vpop.xlane.xlu1 %1001  ;;  %v999_v29 = vpop.xlane.xlu0 %998 }
 0x2cf   :  { %2356 = vpow2.f32 %v1024_v27  ;;  %v1016_v30 = vsub.f32 %v762_v60, %v1002_v28  ;;  %v1015_v31 = vsub.f32 %v688_v59, %v999_v29 }
 0x2d1   :  { %v1028_v32 = vmul.f32 1.442695, %v1016_v30  ;;  %v1026_v33 = vmul.f32 1.442695, %v1015_v31 }
 0x2d2   :  { %v1005_v34 = vpop.xlane.xlu0 %1004 }
 0x2d3   :  { %2358 = vpow2.f32 %v1028_v32  ;;  %v1017_v35 = vsub.f32 %v836_v1, %v1005_v34  ;;  %v1695_v32 = vld [vmem:[#allocation5 + $0x18] sm:$0xff]  ;;  %v1693_v34 = vld [vmem:[#allocation5 + $0x8] sm:$0xff] }
 0x2d4   :  { %2360 = vpow2.f32 %v1026_v33  ;;  %v1694_v33 = vld [vmem:[#allocation5 + $0x10] sm:$0xff] }
 0x2d5   :  { %v1030_v36 = vmul.f32 1.442695, %v1017_v35 }
 0x2d6   :  { %v1008_v37 = vpop.xlane.xlu1 %1007  ;;  %v1011_v38 = vpop.xlane.xlu0 %1010 }
 0x2d7   :  { %2362 = vpow2.f32 %v1030_v36  ;;  %v1018_v39 = vsub.f32 %v910_v7, %v1008_v37  ;;  %v1019_v40 = vsub.f32 %v984_v6, %v1011_v38  ;;  %v1692_v37 = vld [vmem:[#allocation5] sm:$0xff] }
 0x2d9   :  { %v1032_v41 = vmul.f32 1.442695, %v1018_v39  ;;  %v1034_v42 = vmul.f32 1.442695, %v1019_v40 }
 0x2da   :  { %v377_v43 = vpop.permute.xlu1 %376  ;;  %v380_v0 = vpop.permute.xlu0 %379 }
 0x2db   :  { %v2355_v44 = vpop.eup %2354  ;;  %2364 = vpow2.f32 %v1032_v41  ;;  %2263 = vmatpush3.msra.mxu1 %v377_v43 }
 0x2dc   :  { %v2357_v45 = vpop.eup %2356  ;;  %2366 = vpow2.f32 %v1034_v42  ;;  %v1039_v46 = vsel %vm395_vm2, %v2355_v44, 0.0  ;;  %2272 = vmatprep.subr.mxu1 %v2506_v10 }
 0x2dd   :  { %1040 = vadd.xlane.f32.xlu0 %v1039_v46  ;;  %v1042_v48 = vsel %vm395_vm2, %v2357_v45, 0.0 }
 0x2de   :  { %1043 = vadd.xlane.f32.xlu1 %v1042_v48  ;;  %v383_v59 = vpop.permute.xlu1 %382 }
 0x2e0   :  { %v2359_v49 = vpop.eup %2358 }
 0x2e1   :  { %v2361_v50 = vpop.eup %2360  ;;  %v1048_v51 = vsel %vm395_vm2, %v2359_v49, 0.0 }
 0x2e2   :  { %1049 = vadd.xlane.f32.xlu1 %v1048_v51  ;;  %v1045_v52 = vsel %vm395_vm2, %v2361_v50, 0.0  ;;  %v387_v60 = vpop.permute.xlu1 %386 }
 0x2e3   :  { %1046 = vadd.xlane.f32.xlu0 %v1045_v52 }
 0x2e4   :  { %v2363_v53 = vpop.eup %2362 }
 0x2e5   :  { %v1051_v54 = vsel %vm395_vm2, %v2363_v53, 0.0 }
 0x2e7   :  { %1052 = vadd.xlane.f32.xlu0 %v1051_v54 }
 0x2e8   :  { %v2730_v55 = vpop.eup %2364 }
 0x2e9   :  { %v2732_v56 = vpop.eup %2366  ;;  %v1054_v57 = vsel %vm395_vm2, %v2730_v55, 0.0 }
 0x2ea   :  { %1055 = vadd.xlane.f32.xlu1 %v1054_v57  ;;  %v1057_v58 = vsel %vm395_vm2, %v2732_v56, 0.0 }
 0x2eb   :  { %1058 = vadd.xlane.f32.xlu0 %v1057_v58 }
 0x2fb   :  { %392 = vrot.lane.b32.xlu1 %v2707_v47, %s2508_s3 }
 0x301   :  { %389 = vrot.lane.b32.xlu0 %v2707_v47, %s2510_s24 }
 0x313   :  { %v1038_v61 = vpop.xlane.xlu1 %1037 }
 0x314   :  { %2368 = vrcp.f32 %v1038_v61 }
 0x321   :  { %v2369_v62 = vpop.eup %2368 }
 0x322   :  { %v1061_v63 = vmul.f32 %v2369_v62, %v2353_v19  ;;  %v1698_v62 = vsub.s32 3, %v2630_v14 }
 0x324   :  { %2260 = vmatmul.mubr.msk.f32.vlgmr.msra.gmra.mxu0 %vm395_vm2, %v1061_v63  ;;  %v1699_v63 = vrot.slane %v2639_v18, %v1698_v62 }
 0x325   :  { %2268 = vmatpush3.msra.mxu0 %v380_v0  ;;  %2269 = vmatprep.mubr.msk.f32.mxu0 %vm2507_vm1, %v2506_v10 }
 0x326   :  { %2277 = vmatprep.subr.mxu0 %v2506_v10 }
 0x366   :  { %v1041_v1 = vpop.xlane.xlu0 %1040 }
 0x367   :  { %2370 = vrcp.f32 %v1041_v1  ;;  %v1044_v3 = vpop.xlane.xlu1 %1043 }
 0x368   :  { %2372 = vrcp.f32 %v1044_v3 }
 0x36b   :  { %v1050_v4 = vpop.xlane.xlu1 %1049 }
 0x36c   :  { %2374 = vrcp.f32 %v1050_v4  ;;  %v1047_v6 = vpop.xlane.xlu0 %1046 }
 0x36d   :  { %2376 = vrcp.f32 %v1047_v6 }
 0x370   :  { %v1053_v7 = vpop.xlane.xlu0 %1052 }
 0x371   :  { %2378 = vrcp.f32 %v1053_v7 }
 0x373   :  { %v1056_v8 = vpop.xlane.xlu1 %1055 }
 0x374   :  { %v2371_v9 = vpop.eup %2370  ;;  %2380 = vrcp.f32 %v1056_v8  ;;  %v1059_v11 = vpop.xlane.xlu0 %1058 }
 0x375   :  { %v2373_v12 = vpop.eup %2372  ;;  %2382 = vrcp.f32 %v1059_v11  ;;  %v1063_v13 = vmul.f32 %v2371_v9, %v2355_v44 }
 0x376   :  { %v1065_v15 = vmul.f32 %v2373_v12, %v2357_v45 }
 0x377   :  { %2265 = vmatmul.mubr.msk.f32.vlgmr.msra.gmra.mxu1 %vm395_vm2, %v1063_v13  ;;  %v393_v26 = vpop.permute.xlu1 %392 }
 0x378   :  { %2273 = vmatpush3.msra.mxu1 %v383_v59  ;;  %2270 = vmatmul.mubr.msk.f32.vlgmr.msra.gmra.mxu0 %vm395_vm2, %v1065_v15  ;;  %v390_v22 = vpop.permute.xlu0 %389  ;;  %v1829_v15 = vld [vmem:[#allocation7 + $0x18] sm:$0xff] }
 0x379   :  { %v2375_v16 = vpop.eup %2374  ;;  %2278 = vmatpush3.msra.mxu0 %v2707_v47  ;;  %2274 = vmatprep.mubr.msk.f32.mxu1 %vm2507_vm1, %v2506_v10 }
 0x37a   :  { %v2377_v19 = vpop.eup %2376  ;;  %2279 = vmatprep.mubr.msk.f32.mxu0 %vm2507_vm1, %v2506_v10  ;;  %2282 = vmatprep.subr.mxu1 %v2506_v10  ;;  %v1069_v20 = vmul.f32 %v2375_v16, %v2359_v49  ;;  %v1828_v16 = vld [vmem:[#allocation7 + $0x10] sm:$0xff] }
 0x37b   :  { %2287 = vmatprep.subr.mxu0 %v2506_v10  ;;  %v1067_v21 = vmul.f32 %v2377_v19, %v2361_v50  ;;  %v1826_v19 = vld [vmem:[#allocation7] sm:$0xff] }
 0x37c   :  { %2280 = vmatmul.mubr.msk.f32.vlgmr.msra.gmra.mxu0 %vm395_vm2, %v1069_v20  ;;  %v1924_v20 = vld [vmem:[%s2845_s6 + $0x38] sm:$0xff] }
 0x37d   :  { %2275 = vmatmul.mubr.msk.f32.vlgmr.msra.gmra.mxu1 %vm395_vm2, %v1067_v21  ;;  %2288 = vmatpush3.msra.mxu0 %v390_v22  ;;  %v1923_v21 = vld [vmem:[%s2845_s6 + $0x30] sm:$0xff]  ;;  %v1922_v22 = vld [vmem:[%s2845_s6 + $0x28] sm:$0xff] }
 0x37e   :  { %v2379_v47 = vpop.eup %2378  ;;  %2283 = vmatpush3.msra.mxu1 %v387_v60  ;;  %2284 = vmatprep.mubr.msk.f32.mxu1 %vm2507_vm1, %v2506_v10 }
 0x37f   :  { %2292 = vmatprep.subr.mxu1 %v2506_v10  ;;  %v1071_v23 = vmul.f32 %v2379_v47, %v2363_v53  ;;  %2289 = vmatprep.mubr.msk.f32.mxu0 %vm2507_vm1, %v2506_v10  ;;  %v1921_v47 = vld [vmem:[%s2845_s6 + $0x20] sm:$0xff] }
 0x380   :  { %2297 = vmatprep.subr.mxu0 %v1695_v32 }
 0x381   :  { %v2381_v25 = vpop.eup %2380  ;;  %2285 = vmatmul.mubr.msk.f32.vlgmr.msra.gmra.mxu1 %vm395_vm2, %v1071_v23 }
 0x382   :  { %v2383_v27 = vpop.eup %2382  ;;  %2293 = vmatpush3.msra.mxu1 %v393_v26  ;;  %2294 = vmatprep.mubr.msk.f32.mxu1 %vm2507_vm1, %v2506_v10  ;;  %v1073_v28 = vmul.f32 %v2381_v25, %v2730_v55 }
 0x383   :  { %v1075_v29 = vmul.f32 %v2383_v27, %v2732_v56  ;;  %2308 = vmatprep.subr.mxu1 %v1829_v15 }
 0x384   :  { %2290 = vmatmul.mubr.msk.f32.vlgmr.msra.gmra.mxu0 %vm395_vm2, %v1073_v28 }
 0x385   :  { %2295 = vmatmul.mubr.msk.f32.vlgmr.msra.gmra.mxu1 %vm395_vm2, %v1075_v29  ;;  %2298 = vmatpush3.msra.mxu0 %v1695_v32 }
 0x386   :  { %2299 = vmatprep.subr.mxu0 %v1694_v33  ;;  %2309 = vmatpush3.msra.mxu1 %v1829_v15 }
 0x387   :  { %2300 = vmatpush3.msra.mxu0 %v1694_v33  ;;  %2310 = vmatprep.subr.mxu1 %v1828_v16 }
 0x388   :  { %2301 = vmatprep.subr.mxu0 %v1693_v34  ;;  %2311 = vmatpush3.msra.mxu1 %v1828_v16 }
 0x389   :  { %2302 = vmatpush3.msra.mxu0 %v1693_v34 }
 0x38a   :  { %2303 = vmatprep.subr.mxu0 %v1692_v37 }
 0x38b   :  { %2304 = vmatpush3.msra.mxu0 %v1692_v37  ;;  %v1816_v37 = vsub.s32 4, %v2630_v14 }
 0x38c   :  { %2319 = vmatprep.subr.mxu0 %v1924_v20 }
 0x3e4   :  { %v1145_v30 = vpop.f32.mrf.mxu0 }
 0x3e6   :  { %v2261_v31 = vpop.f32.mrf.mxu0 }
 0x437   :  { %v1218_v35 = vpop.f32.mrf.mxu1 }
 0x438   :  { %v1291_v36 = vpop.f32.mrf.mxu0  ;;  %1661 = vrot.lane.b32.xlu0 %v1218_v35, %s2503_s11 }
 0x439   :  { %1665 = vrot.lane.b32.xlu1 %v1291_v36, %s2511_s5  ;;  %v2266_v10 = vpop.f32.mrf.mxu1 }
 0x43a   :  { %v2271_v38 = vpop.f32.mrf.mxu0 }
 0x43b   :  { %v1822_v38 = vsub.s32 5, %v2630_v14 }
 0x43c   :  { %v1437_v39 = vpop.f32.mrf.mxu0 }
 0x43d   :  { %v1364_v40 = vpop.f32.mrf.mxu1 }
 0x43e   :  { %1669 = vrot.lane.b32.xlu1 %v1364_v40, %s2512_s25  ;;  %v2281_v41 = vpop.f32.mrf.mxu0  ;;  %v1817_v40 = vrot.slane %v2639_v18, %v1816_v37 }
 0x43f   :  { %v2276_v42 = vpop.f32.mrf.mxu1 }
 0x441   :  { %v1510_v43 = vpop.f32.mrf.mxu1 }
 0x442   :  { %1678 = vrot.lane.b32.xlu0 %v1510_v43, %s2503_s11  ;;  %v1823_v43 = vrot.slane %v2639_v18, %v1822_v38 }
 0x443   :  { %v2286_v44 = vpop.f32.mrf.mxu1 }
 0x444   :  { %v1583_v45 = vpop.f32.mrf.mxu0 }
 0x445   :  { %v1656_v46 = vpop.f32.mrf.mxu1 }
 0x446   :  { %1682 = vrot.lane.b32.xlu0 %v1583_v45, %s2511_s5  ;;  %1686 = vrot.lane.b32.xlu1 %v1656_v46, %s2512_s25  ;;  %v2291_v48 = vpop.f32.mrf.mxu0 }
 0x447   :  { %v2296_v49 = vpop.f32.mrf.mxu1 }
 0x4aa   :  { %v1662_v50 = vpop.permute.xlu0 %1661 }
 0x4ab   :  { %v1666_v51 = vpop.permute.xlu1 %1665  ;;  %v1672_v52 = vsel %vm395_vm2, %v1145_v30, %v1662_v50 }
 0x4ac   :  { %v1674_v53 = vsel %vm1673_vm3, %v1672_v52, %v1666_v51  ;;  %v1920_v52 = vld [vmem:[%s2845_s6 + $0x18] sm:$0xff] }
 0x4b0   :  { %v1670_v54 = vpop.permute.xlu1 %1669 }
 0x4b1   :  { %v1676_v55 = vsel %vm1675_vm4, %v1674_v53, %v1670_v54  ;;  %v1919_v53 = vld [vmem:[%s2845_s6 + $0x10] sm:$0xff]  ;;  %v1918_v54 = vld [vmem:[%s2845_s6 + $0x8] sm:$0xff] }
 0x4b2   :  { %2305 = vmatprep.mubr.msk.f32.mxu0 %vm97_vm0, %v1676_v55  ;;  %v1917_v55 = vld [vmem:[%s2845_s6] sm:$0xff]  ;;  %s2513_s6 = smov [#allocation10]  }
 0x4b3   :  { %s2062_s20 = sshll.u32 %s2513_s6, 4  ;;  %s2063_s20 = int_to_ptr.vmem [resolvable:$true] %s2062_s20 }
 0x4b4   :  { %v1679_v56 = vpop.permute.xlu0 %1678  ;;  %s2472_s2 = scalar_lea.vmem %s2063_s20, 256  ;;  %p2477_p7 = scmp.lt.s32.totalorder %s2063_s20, %s2063_s20 }
 0x4b5   :  { %v1689_v57 = vsel %vm395_vm2, %v1437_v39, %v1679_v56  ;;  %v1832_v56 = vsub.s32 6, %v2630_v14  ;;  %p2473_p6 = scmp.ne.s32.totalorder %s2063_s20, %s2472_s2  ;;  %p2478_p8 = scmp.lt.s32.totalorder %s2472_s2, %s2472_s2 }
 0x4b7   :  { %p2479_p9 = por %p2478_p8, %p2477_p7 }
 0x4b8   :  { %v1683_v58 = vpop.permute.xlu0 %1682  ;;  %v1687_v59 = vpop.permute.xlu1 %1686 }
 0x4b9   :  { %v1690_v60 = vsel %vm1673_vm3, %v1689_v57, %v1683_v58  ;;  %v1833_v57 = vrot.slane %v2639_v18, %v1832_v56  ;;  %p2480_p10 = pnand %p2479_p9, %p2473_p6 }
 0x4ba   :  { %v1691_v61 = vsel %vm1675_vm4, %v1690_v60, %v1687_v59 }
 0x4bb   :  { %2306 = vmatmul.mubr.msk.f32.vlgmr.msra.gmra.mxu0 %vm97_vm0, %v1691_v61 }
 0x4bc   :  { %2320 = vmatpush3.msra.mxu0 %v1924_v20 }
 0x4bd   :  { %2321 = vmatprep.subr.mxu0 %v1923_v21 }
 0x4be   :  { %2322 = vmatpush3.msra.mxu0 %v1923_v21 }
 0x4bf   :  { %2323 = vmatprep.subr.mxu0 %v1922_v22 }
 0x4c0   :  { %2324 = vmatpush3.msra.mxu0 %v1922_v22 }
 0x4c1   :  { %2325 = vmatprep.subr.mxu0 %v1921_v47 }
 0x4c2   :  { %2326 = vmatpush3.msra.mxu0 %v1921_v47 }
 0x4c3   :  { %2327 = vmatprep.subr.mxu0 %v1920_v52 }
 0x4c4   :  { %2328 = vmatpush3.msra.mxu0 %v1920_v52 }
 0x4c5   :  { %2329 = vmatprep.subr.mxu0 %v1919_v53 }
 0x4c6   :  { %2330 = vmatpush3.msra.mxu0 %v1919_v53 }
 0x4c7   :  { %2331 = vmatprep.subr.mxu0 %v1918_v54 }
 0x4c8   :  { %2332 = vmatpush3.msra.mxu0 %v1918_v54 }
 0x4c9   :  { %2333 = vmatprep.subr.mxu0 %v1917_v55 }
 0x4ca   :  { %2334 = vmatpush3.msra.mxu0 %v1917_v55 }
 0x57b   :  { %v2307_v0 = vpop.f32.mrf.mxu0 }
 0x57c   :  { %v1778_v1 = vadd.f32 %v2307_v0, %v1699_v63  ;;  %v1927_v0 = vsub.s32 7, %v2630_v14 }
 0x57d   :  { %v1772_v3 = vpop.f32.mrf.mxu0 }
 0x57e   :  { %v2778_v4 = vadd.f32 %v1778_v1, %v2601_v5  ;;  %v1773_v6 = vadd.f32 %v1772_v3, %v1699_v63  ;;  %v1928_v1 = vrot.slane %v2639_v18, %v1927_v0 }
 0x580   :  { %v1781_v7 = vadd.f32 %v1773_v6, %v2589_v2  ;;  %v1786_v8 = vsel %vm97_vm0, %v2778_v4, 0.0  ;;  %v1793_v13 = vmul.f32 %v2778_v4, %v2778_v4  ;;  %v1827_v2 = vld [vmem:[#allocation7 + $0x8] sm:$0xff] }
 0x581   :  { %1787 = vadd.xlane.f32.xlu1 %v1786_v8  ;;  %2312 = vmatprep.subr.mxu1 %v1827_v2 }
 0x582   :  { %v1783_v9 = vsel %vm97_vm0, %v1781_v7, 0.0  ;;  %v1792_v11 = vmul.f32 %v1781_v7, %v1781_v7  ;;  %v1797_v5 = vsel %vm97_vm0, %v1793_v13, 0.0  ;;  %2313 = vmatpush3.msra.mxu1 %v1827_v2 }
 0x583   :  { %1784 = vadd.xlane.f32.xlu0 %v1783_v9  ;;  %2314 = vmatprep.subr.mxu1 %v1826_v19 }
 0x584   :  { %v1794_v12 = vsel %vm97_vm0, %v1792_v11, 0.0  ;;  %2315 = vmatpush3.msra.mxu1 %v1826_v19 }
 0x587   :  { %1795 = vadd.xlane.f32.xlu0 %v1794_v12 }
 0x58b   :  { %1798 = vadd.xlane.f32.xlu0 %v1797_v5 }
 0x60a   :  { %v1788_v26 = vpop.xlane.xlu1 %1787 }
 0x60b   :  { %v1791_v28 = vmul.f32 0.03125, %v1788_v26 }
 0x60c   :  { %v1785_v23 = vpop.xlane.xlu0 %1784 }
 0x60d   :  { %v1790_v25 = vmul.f32 0.03125, %v1785_v23  ;;  %v1803_v33 = vmul.f32 %v1791_v28, %v1791_v28  ;;  %v1807_v44 = vsub.f32 %v2778_v4, %v1791_v28 }
 0x60f   :  { %v1802_v29 = vmul.f32 %v1790_v25, %v1790_v25  ;;  %v1806_v39 = vsub.f32 %v1781_v7, %v1790_v25 }
 0x610   :  { %v1796_v27 = vpop.xlane.xlu0 %1795 }
 0x611   :  { %v1800_v30 = vmul.f32 0.03125, %v1796_v27 }
 0x613   :  { %v1804_v31 = vsub.f32 %v1800_v30, %v1802_v29 }
 0x614   :  { %v1799_v32 = vpop.xlane.xlu0 %1798 }
 0x615   :  { %v1808_v34 = vadd.f32 1e-05, %v1804_v31  ;;  %v1801_v35 = vmul.f32 0.03125, %v1799_v32  ;;  %v88_v31 = vld [vmem:[#allocation8 + $0x8] sm:$0x3] }
 0x616   :  { %v2046_v32 = vrot.slane %v88_v31, %v95_v17 }
 0x617   :  { %2384 = vrsqrt.f32 %v1808_v34  ;;  %v1805_v36 = vsub.f32 %v1801_v35, %v1803_v33  ;;  %v2052_v35 = vrot.slane %v88_v31, %v187_v24 }
 0x619   :  { %v1809_v10 = vadd.f32 1e-05, %v1805_v36 }
 0x61b   :  { %2386 = vrsqrt.f32 %v1809_v10 }
 0x624   :  { %v2385_v41 = vpop.eup %2384 }
 0x625   :  { %v1812_v42 = vmul.f32 %v2385_v41, %v1806_v39 }
 0x627   :  { %v1818_v45 = vmul.f32 %v1817_v40, %v1812_v42 }
 0x628   :  { %v2387_v46 = vpop.eup %2386 }
 0x629   :  { %v1813_v48 = vmul.f32 %v2387_v46, %v1807_v44  ;;  %v1824_v49 = vadd.f32 %v1823_v43, %v1818_v45 }
 0x62b   :  { %v1819_v50 = vmul.f32 %v1817_v40, %v1813_v48  ;;  %2316 = vmatprep.mubr.msk.f32.mxu1 %vm97_vm0, %v1824_v49 }
 0x62d   :  { %v1825_v51 = vadd.f32 %v1823_v43, %v1819_v50 }
 0x62f   :  { %2317 = vmatmul.mubr.msk.f32.vlgmr.msra.gmra.mxu1 %vm97_vm0, %v1825_v51 }
 0x6ef   :  { %v2318_v58 = vpop.f32.mrf.mxu1 }
 0x6f0   :  { %v1912_v59 = vadd.f32 %v2318_v58, %v1833_v57 }
 0x6f1   :  { %v1906_v60 = vpop.f32.mrf.mxu1 }
 0x6f2   :  { %v1907_v61 = vadd.f32 %v1906_v60, %v1833_v57  ;;  %v1916_v63 = vmax.f32 %v1912_v59, 0.0 }
 0x6f4   :  { %v1915_v62 = vmax.f32 %v1907_v61, 0.0 }
 0x6f6   :  { %2335 = vmatprep.mubr.msk.f32.mxu0 %vm1929_vm5, %v1915_v62 }
 0x6f7   :  { %2336 = vmatmul.mubr.msk.f32.vlgmr.msra.gmra.mxu0 %vm1929_vm5, %v1916_v63 }
 0x7b7   :  { %v2337_v3 = vpop.f32.mrf.mxu0 }
 0x7b8   :  { %v2008_v4 = vadd.f32 %v2337_v3, %v1928_v1 }
 0x7b9   :  { %v2002_v6 = vpop.f32.mrf.mxu0 }
 0x7ba   :  { %v2012_v7 = vadd.f32 %v2008_v4, %v1825_v51  ;;  %v2003_v8 = vadd.f32 %v2002_v6, %v1928_v1 }
 0x7bc   :  { %v2011_v9 = vadd.f32 %v2003_v8, %v1824_v49  ;;  %v2016_v11 = vsel %vm97_vm0, %v2012_v7, 0.0  ;;  %v2022_v12 = vmul.f32 %v2012_v7, %v2012_v7 }
 0x7bd   :  { %2017 = vadd.xlane.f32.xlu0 %v2016_v11 }
 0x7be   :  { %v2013_v13 = vsel %vm97_vm0, %v2011_v9, 0.0  ;;  %v2021_v5 = vmul.f32 %v2011_v9, %v2011_v9  ;;  %v2026_v15 = vsel %vm97_vm0, %v2022_v12, 0.0 }
 0x7bf   :  { %2014 = vadd.xlane.f32.xlu1 %v2013_v13 }
 0x7c0   :  { %v2023_v16 = vsel %vm97_vm0, %v2021_v5, 0.0 }
 0x7c1   :  { %2027 = vadd.xlane.f32.xlu0 %v2026_v15 }
 0x7c3   :  { %2024 = vadd.xlane.f32.xlu1 %v2023_v16 }
 0x846   :  { %v2018_v18 = vpop.xlane.xlu0 %2017 }
 0x847   :  { %v2020_v2 = vmul.f32 0.03125, %v2018_v18 }
 0x848   :  { %v2015_v19 = vpop.xlane.xlu1 %2014 }
 0x849   :  { %v2019_v20 = vmul.f32 0.03125, %v2015_v19  ;;  %v2032_v22 = vmul.f32 %v2020_v2, %v2020_v2  ;;  %v2036_v33 = vsub.f32 %v2012_v7, %v2020_v2 }
 0x84a   :  { %v2028_v21 = vpop.xlane.xlu0 %2027 }
 0x84b   :  { %v2030_v47 = vmul.f32 0.03125, %v2028_v21  ;;  %v2031_v25 = vmul.f32 %v2019_v20, %v2019_v20  ;;  %v2035_v36 = vsub.f32 %v2011_v9, %v2019_v20 }
 0x84c   :  { %v2025_v23 = vpop.xlane.xlu1 %2024 }
 0x84d   :  { %v2034_v26 = vsub.f32 %v2030_v47, %v2032_v22  ;;  %v2029_v27 = vmul.f32 0.03125, %v2025_v23 }
 0x84f   :  { %v2038_v28 = vadd.f32 1e-05, %v2034_v26  ;;  %v2033_v29 = vsub.f32 %v2029_v27, %v2031_v25 }
 0x851   :  { %2388 = vrsqrt.f32 %v2038_v28  ;;  %v2037_v30 = vadd.f32 1e-05, %v2033_v29 }
 0x853   :  { %2390 = vrsqrt.f32 %v2037_v30 }
 0x85e   :  { %v2389_v34 = vpop.eup %2388 }
 0x85f   :  { %v2042_v10 = vmul.f32 %v2389_v34, %v2036_v33 }
 0x860   :  { %v2391_v37 = vpop.eup %2390 }
 0x861   :  { %v2041_v38 = vmul.f32 %v2391_v37, %v2035_v36  ;;  %v2048_v39 = vmul.f32 %v2046_v32, %v2042_v10 }
 0x863   :  { %v2047_v40 = vmul.f32 %v2046_v32, %v2041_v38  ;;  %v2054_v41 = vadd.f32 %v2052_v35, %v2048_v39 }
 0x865   :  { %v2053_v42 = vadd.f32 %v2052_v35, %v2047_v40  ;;  %2056 = vst.msk [vmem:[#allocation10 + $0x8] sm:$0xff] %vm97_vm0, %v2054_v41 }
 0x867   :  { %2055 = vst.msk [vmem:[#allocation10] sm:$0xff] %vm97_vm0, %v2053_v42 }
 0x868   :  { %2483 = shalt.err (!%p2480_p10)
}
 0x869   :  { %2068 = dma.vmem_to_hbm [thread:$0]  %s2063_s20, 256, %s2847_s8, [#allocation4], %s2502_s10, %s2502_s10, %s2503_s11  }
 0x86a   :  { %2498 = dma.done.wait [#allocation4], 256  }
 0x86b   :  { %2499 = vsyncadd [#allocation4], 4294967040 }
 0x86c   :  { %2072 = vsyncpa [#allocation3], 1 }
 0x86d   :  { %2073 = vsyncpa [#allocation6], 1 }
 0x86e   :  { %2074 = vsyncpa [#allocation9], 1 }
 0x86f   :  { %2075 = vsyncpa [#allocation4], 1 }

</bundles_post_ra>
